<compile_context>
chip_gen: v7x
topology: tpu7x:2x2x1
jax: 0.10.0
libtpu: 0.0.40
codegen_flags: <defaults>
</compile_context>

<pallas_src>
import functools

import jax
import jax.numpy as jnp
from jax.experimental import pallas as pl
from jax.experimental.pallas import tpu as pltpu

IN_FEATURES = 784
HIDDEN = 128
OUT_FEATURES = 10
OUT_PADDED = 128            # lane-dense second-layer N (pad 10 -> 128)
DEFAULT_BATCH_TILE = 2048   # sweepable; ~16 MiB VMEM footprint at f32 x


def _mlp_kernel(x_ref, w1_ref, b1_ref, w2_ref, b2_ref, o_ref):
    # Cast x to bf16 in-kernel (VPU, hidden under the tile DMA). No-op if the
    # producer already supplies bf16.
    x = x_ref[...].astype(jnp.bfloat16)
    # Layer 1: Linear(784 -> 128), bf16 operands, f32 accumulate on the MXU.
    h = jnp.dot(x, w1_ref[...], preferred_element_type=jnp.float32)
    h = jnp.maximum(h + b1_ref[...], 0.0)           # bias + ReLU in f32 (VPU)
    # Dropout(p=0.2): identity in eval/inference mode (no scaling applied).
    # TODO(synk): training-mode dropout would need pltpu.prng_seed/prng_random_bits masking.
    # Layer 2: Linear(128 -> 128-padded); real outputs live in columns [0, 10).
    out = jnp.dot(h.astype(jnp.bfloat16), w2_ref[...],
                  preferred_element_type=jnp.float32)
    o_ref[...] = (out + b2_ref[...]).astype(o_ref.dtype)


def pack_params(w1, b1, w2, b2):
    """One-time parameter packing (do this at load time, not per forward call).

    w1: (784, 128), b1: (1, 128) or (128,), w2: (128, 10), b2: (1, 10) or (10,).
    Returns bf16 MXU weights with the second layer zero-padded to 128 lanes.
    """
    w1p = w1.astype(jnp.bfloat16)                                   # (784, 128)
    b1p = b1.reshape(1, HIDDEN).astype(jnp.float32)                 # (1, 128)
    w2p = jnp.zeros((HIDDEN, OUT_PADDED), jnp.bfloat16)
    w2p = w2p.at[:, :OUT_FEATURES].set(w2.astype(jnp.bfloat16))     # (128, 128)
    b2p = jnp.zeros((1, OUT_PADDED), jnp.float32)
    b2p = b2p.at[:, :OUT_FEATURES].set(
        b2.reshape(1, OUT_FEATURES).astype(jnp.float32))            # (1, 128)
    return w1p, b1p, w2p, b2p


@functools.partial(jax.jit, static_argnames=("batch_tile", "return_padded"))
def simple_nn_forward(x, w1p, b1p, w2p, b2p, *,
                      batch_tile=DEFAULT_BATCH_TILE, return_padded=False):
    """x: (B, 1, 28, 28) or any (B, ...) flattening to 784 features (f32 or bf16).

    Params must come from pack_params(). Returns (B, 10) f32 logits, or the raw
    (B, 128) lane-padded buffer if return_padded=True (lets the consumer fuse the
    column slice and avoid an extra HBM pass).
    """
    B = x.shape[0]
    x2d = x.reshape(B, -1)                          # == x.view(x.size(0), -1)
    assert x2d.shape[1] == IN_FEATURES

    # Batch tiling: one block for small B, otherwise TB-row tiles (TB multiple of
    # 8). No padding copy: grid = cdiv(B, TB); Pallas masks the ragged last block
    # (OOB x rows feed garbage that only reaches dropped output rows).
    tb = B if B <= batch_tile else batch_tile
    grid = (pl.cdiv(B, tb),)

    itemsize = jnp.dtype(x2d.dtype).itemsize
    cost = pl.CostEstimate(
        flops=2 * B * (IN_FEATURES * HIDDEN + HIDDEN * OUT_PADDED),
        transcendentals=0,
        bytes_accessed=B * IN_FEATURES * itemsize + B * OUT_PADDED * 4
                       + (IN_FEATURES * HIDDEN + HIDDEN * OUT_PADDED) * 2,
    )

    out_padded = pl.pallas_call(
        _mlp_kernel,
        out_shape=jax.ShapeDtypeStruct((B, OUT_PADDED), jnp.float32),
        grid=grid,
        in_specs=[
            pl.BlockSpec((tb, IN_FEATURES), lambda i: (i, 0)),       # streamed per tile
            pl.BlockSpec((IN_FEATURES, HIDDEN), lambda i: (0, 0)),   # VMEM-resident
            pl.BlockSpec((1, HIDDEN), lambda i: (0, 0)),             # VMEM-resident
            pl.BlockSpec((HIDDEN, OUT_PADDED), lambda i: (0, 0)),    # VMEM-resident
            pl.BlockSpec((1, OUT_PADDED), lambda i: (0, 0)),         # VMEM-resident
        ],
        out_specs=pl.BlockSpec((tb, OUT_PADDED), lambda i: (i, 0)),  # lane-dense stores
        compiler_params=pltpu.CompilerParams(
            dimension_semantics=("parallel",),       # batch tiles are independent
            vmem_limit_bytes=48 * 1024 * 1024,       # headroom under v7x 64 MiB
        ),
        cost_estimate=cost,
    )(x2d, w1p, b1p, w2p, b2p)

    if return_padded:
        return out_padded
    return out_padded[:, :OUT_FEATURES]


def init_params(key):
    """Deterministic init mirroring nn.Linear shapes (stored transposed: (in, out))."""
    k1, k2, k3, k4 = jax.random.split(key, 4)
    # Uniform(-1/sqrt(fan_in), 1/sqrt(fan_in)) like PyTorch's default Linear init.
    lim1 = 1.0 / jnp.sqrt(jnp.float32(IN_FEATURES))
    lim2 = 1.0 / jnp.sqrt(jnp.float32(HIDDEN))
    w1 = jax.random.uniform(k1, (IN_FEATURES, HIDDEN), jnp.float32, -lim1, lim1)
    b1 = jax.random.uniform(k2, (1, HIDDEN), jnp.float32, -lim1, lim1)
    w2 = jax.random.uniform(k3, (HIDDEN, OUT_FEATURES), jnp.float32, -lim2, lim2)
    b2 = jax.random.uniform(k4, (1, OUT_FEATURES), jnp.float32, -lim2, lim2)
    return w1, b1, w2, b2


if __name__ == "__main__":
    key = jax.random.PRNGKey(0)
    kx, kp = jax.random.split(key)

    B = 2
    x = jax.random.normal(kx, (B, 1, 28, 28), jnp.float32)   # NCHW, flattens to 784
    w1, b1, w2, b2 = init_params(kp)

    # One-time weight packing (bf16 cast + lane padding), outside the forward path.
    packed = pack_params(w1, b1, w2, b2)

    out = simple_nn_forward(x, *packed)
    out = jax.block_until_ready(out)

    # Pure-JAX f32 reference (eval-mode dropout == identity). Kernel uses bf16 MXU
    # operands with f32 accumulation -> bf16-appropriate tolerance.
    x2d = x.reshape(B, -1)
    ref = jnp.maximum(x2d @ w1 + b1, 0.0) @ w2 + b2
    assert out.shape == (B, OUT_FEATURES)
    assert jnp.allclose(out, ref, atol=5e-2, rtol=5e-2), float(jnp.max(jnp.abs(out - ref)))

    print("KERNEL_OK")
</pallas_src>

<mosaic_0001>
module attributes {stable_mosaic.version = 11 : i64} {
  func.func @_mlp_kernel(%arg0: i32, %arg1: memref<2x784xf32, #tpu.memory_space<vmem>>, %arg2: memref<784x128xbf16, #tpu.memory_space<vmem>>, %arg3: memref<1x128xf32, #tpu.memory_space<vmem>>, %arg4: memref<128x128xbf16, #tpu.memory_space<vmem>>, %arg5: memref<1x128xf32, #tpu.memory_space<vmem>>, %arg6: memref<2x128xf32, #tpu.memory_space<vmem>>) attributes {dimension_semantics = [#tpu.dimension_semantics<parallel>], iteration_bounds = array<i64: 1>, scalar_prefetch = 0 : i64, scratch_operands = 0 : i64, tpu.core_type = #tpu.core_type<tc>, window_params = [{transform_indices = @transform_0, window_bounds = array<i64: 2, 784>}, {pipeline_mode = #tpu.pipeline_mode<synchronous>, transform_indices = @transform_1, window_bounds = array<i64: 784, 128>}, {pipeline_mode = #tpu.pipeline_mode<synchronous>, transform_indices = @transform_2, window_bounds = array<i64: 1, 128>}, {pipeline_mode = #tpu.pipeline_mode<synchronous>, transform_indices = @transform_3, window_bounds = array<i64: 128, 128>}, {pipeline_mode = #tpu.pipeline_mode<synchronous>, transform_indices = @transform_4, window_bounds = array<i64: 1, 128>}, {transform_indices = @transform_5, window_bounds = array<i64: 2, 128>}]} {
    %c0 = arith.constant 0 : index
    %c0_0 = arith.constant 0 : index
    %0 = vector.load %arg1[%c0, %c0_0] : memref<2x784xf32, #tpu.memory_space<vmem>>, vector<2x784xf32>
    %1 = arith.truncf %0 : vector<2x784xf32> to vector<2x784xbf16>
    %c0_1 = arith.constant 0 : index
    %c0_2 = arith.constant 0 : index
    %2 = vector.load %arg2[%c0_1, %c0_2] : memref<784x128xbf16, #tpu.memory_space<vmem>>, vector<784x128xbf16>
    %cst = arith.constant dense<0.000000e+00> : vector<2x128xf32>
    %3 = tpu.matmul %1, %2, %cst {dimension_numbers = #tpu.dot_dimension_numbers<[1], [0], [0], [1], [0, 0, 1, 1], [], []>} : vector<2x784xbf16>, vector<784x128xbf16>, vector<2x128xf32> -> vector<2x128xf32>
    %c0_3 = arith.constant 0 : index
    %c0_4 = arith.constant 0 : index
    %4 = vector.load %arg3[%c0_3, %c0_4] : memref<1x128xf32, #tpu.memory_space<vmem>>, vector<1x128xf32>
    %5 = vector.broadcast %4 : vector<1x128xf32> to vector<2x128xf32>
    %6 = arith.addf %3, %5 : vector<2x128xf32>
    %cst_5 = arith.constant 0.000000e+00 : f32
    %7 = vector.broadcast %cst_5 : f32 to vector<2x128xf32>
    %8 = arith.maximumf %6, %7 : vector<2x128xf32>
    %9 = arith.truncf %8 : vector<2x128xf32> to vector<2x128xbf16>
    %c0_6 = arith.constant 0 : index
    %c0_7 = arith.constant 0 : index
    %10 = vector.load %arg4[%c0_6, %c0_7] : memref<128x128xbf16, #tpu.memory_space<vmem>>, vector<128x128xbf16>
    %cst_8 = arith.constant dense<0.000000e+00> : vector<2x128xf32>
    %11 = tpu.matmul %9, %10, %cst_8 {dimension_numbers = #tpu.dot_dimension_numbers<[1], [0], [0], [1], [0, 0, 1, 1], [], []>} : vector<2x128xbf16>, vector<128x128xbf16>, vector<2x128xf32> -> vector<2x128xf32>
    %c0_9 = arith.constant 0 : index
    %c0_10 = arith.constant 0 : index
    %12 = vector.load %arg5[%c0_9, %c0_10] : memref<1x128xf32, #tpu.memory_space<vmem>>, vector<1x128xf32>
    %13 = vector.broadcast %12 : vector<1x128xf32> to vector<2x128xf32>
    %14 = arith.addf %11, %13 : vector<2x128xf32>
    %c0_11 = arith.constant 0 : index
    %c0_12 = arith.constant 0 : index
    %15 = vector.load %arg6[%c0_11, %c0_12] : memref<2x128xf32, #tpu.memory_space<vmem>>, vector<2x128xf32>
    tpu.vector_store %arg6[%c0_11, %c0_12], %14 {strides = array<i32>} : memref<2x128xf32, #tpu.memory_space<vmem>>, vector<2x128xf32>,
    return
  }
  func.func @transform_0(%arg0: i32) -> (i32, i32) {
    %c0_i32 = arith.constant 0 : i32
    %c0_i32_0 = arith.constant 0 : i32
    return %arg0, %c0_i32 : i32, i32
  }
  func.func @transform_1(%arg0: i32) -> (i32, i32) {
    %c0_i32 = arith.constant 0 : i32
    %c0_i32_0 = arith.constant 0 : i32
    %c0_i32_1 = arith.constant 0 : i32
    return %c0_i32, %c0_i32_0 : i32, i32
  }
  func.func @transform_2(%arg0: i32) -> (i32, i32) {
    %c0_i32 = arith.constant 0 : i32
    %c0_i32_0 = arith.constant 0 : i32
    %c0_i32_1 = arith.constant 0 : i32
    return %c0_i32, %c0_i32_0 : i32, i32
  }
  func.func @transform_3(%arg0: i32) -> (i32, i32) {
    %c0_i32 = arith.constant 0 : i32
    %c0_i32_0 = arith.constant 0 : i32
    %c0_i32_1 = arith.constant 0 : i32
    return %c0_i32, %c0_i32_0 : i32, i32
  }
  func.func @transform_4(%arg0: i32) -> (i32, i32) {
    %c0_i32 = arith.constant 0 : i32
    %c0_i32_0 = arith.constant 0 : i32
    %c0_i32_1 = arith.constant 0 : i32
    return %c0_i32, %c0_i32_0 : i32, i32
  }
  func.func @transform_5(%arg0: i32) -> (i32, i32) {
    %c0_i32 = arith.constant 0 : i32
    %c0_i32_0 = arith.constant 0 : i32
    return %arg0, %c0_i32 : i32, i32
  }
}

</mosaic_0001>

<bundles_post_ra>
// kernel: simple_nn_forward.1
= control target key start
LH: loop header
LB: loop body
LE: loop exit
PB: predicated region body
PF: predicated region fallthrough
CT: control target
= control target key end

     0   :  { %10 = vsyncpa [#allocation3], 0  ;;  %s1167_s0 = inlined_call_operand.vmem [shape: f32[2,784], index: 0, kind: input, shape index: {}]   ;;  %s1168_s1 = inlined_call_operand.hbm [shape: bf16[784,128], index: 1, kind: input, shape index: {}]   ;;  %s1169_s2 = inlined_call_operand.vmem [shape: f32[1,128], index: 2, kind: input, shape index: {}]   ;;  %s1170_s3 = inlined_call_operand.vmem [shape: bf16[128,128], index: 3, kind: input, shape index: {}]   ;;  %s1171_s4 = inlined_call_operand.vmem [shape: f32[1,128], index: 4, kind: input, shape index: {}]   ;;  %s1172_s5 = inlined_call_operand.hbm [shape: f32[2,128], index: 5, kind: output, shape index: {}]  }
   0x1   :  { %11 = vsyncpa [#allocation4], 0  ;;  %s1056_s18 = smov [#allocation2]   ;;  %s1008_s22 = scalar_lea.hbm %s1168_s1, 6272 }
   0x2   :  { %s19_s19 = sshll.u32 %s1056_s18, 4  ;;  %p1009_p0 = scmp.ne.s32.totalorder %s1168_s1, %s1008_s22  ;;  %s20_s19 = int_to_ptr.vmem [resolvable:$true] %s19_s19 }
   0x3   :  { %p1012_p1 = scmp.lt.u32.totalorder %s1008_s22, %s1168_s1 }
   0x5   :  { %p1014_p2 = pnand %p1012_p1, %p1009_p0 }
   0x7   :  { %1017 = shalt.err (!%p1014_p2)
}
   0x8   :  { %s1018_s27 = scalar_lea.vmem %s20_s19, 6272  ;;  %p1023_p4 = scmp.lt.s32.totalorder %s20_s19, %s20_s19 }
   0x9   :  { %p1019_p3 = scmp.ne.s32.totalorder %s20_s19, %s1018_s27  ;;  %p1024_p5 = scmp.lt.s32.totalorder %s1018_s27, %s1018_s27 }
   0xb   :  { %p1025_p6 = por %p1024_p5, %p1023_p4 }
   0xd   :  { %p1026_p7 = pnand %p1025_p6, %p1019_p3 }
   0xf   :  { %1029 = shalt.err (!%p1026_p7)
}
  0x10   :  { %s1057_s28 = smov 64   ;;  %s1058_s29 = smov 4  }
  0x11   :  { %25 = dma.hbm_to_vmem [thread:$0]  %s1168_s1, 6272, %s20_s19, [#allocation3], %s1057_s28, %s1057_s28, %s1058_s29  }
  0x12   :  { %1052 = dma.done.wait [#allocation3], 6272  }
  0x13   :  { %1053 = vsyncadd [#allocation3], 4294961024  ;;  %v949_v0 = vld [vmem:[#allocation2 + $0x40] sm:$0xff]   ;;  %v953_v4 = vld [vmem:[#allocation2 + $0x48] sm:$0xff]   ;;  %v1059_v21 = vmov 1983009808   ;;  %v44_v23 = vlaneseq }
  0x14   :  { %v950_v1 = vld [vmem:[#allocation2] sm:$0xff]   ;;  %839 = vmatprep.subr.bf16.mxu0 %v949_v0  ;;  %v954_v5 = vld [vmem:[#allocation2 + $0x8] sm:$0xff]   ;;  %v957_v8 = vld [vmem:[#allocation2 + $0x50] sm:$0xff]   ;;  %v42_v22 = vunpack.c.l.s4 %v1059_v21  ;;  %v1060_v45 = vmov 0.0   ;;  %vm1061_vm0 = vmmov 0   ;;  %vm486_vm1 = vcmask 130048  }
  0x15   :  { %v951_v2 = vld [vmem:[#allocation2 + $0xc0] sm:$0xff]   ;;  %840 = vmatpush3.bf16.msra.mxu0 %v950_v1  ;;  %v955_v6 = vld [vmem:[#allocation2 + $0xc8] sm:$0xff]   ;;  %v958_v9 = vld [vmem:[#allocation2 + $0x10] sm:$0xff]   ;;  %v45_v29 = vshrl.u32 %v44_v23, 7  ;;  %s1062_s27 = smov [#allocation5]  }
  0x16   :  { %v952_v3 = vld [vmem:[#allocation2 + $0x80] sm:$0xff]   ;;  %861 = vmatprep.subr.bf16.mxu1 %v951_v2  ;;  %841 = vmatprep.subr.bf16.mxu0 %v953_v4  ;;  %v956_v7 = vld [vmem:[#allocation2 + $0x88] sm:$0xff]   ;;  %v959_v10 = vld [vmem:[#allocation2 + $0xd0] sm:$0xff]   ;;  %v43_v28 = vunpack.c.0.s8 %v42_v22  ;;  %s770_s28 = sshll.u32 %s1062_s27, 4  ;;  %s771_s28 = int_to_ptr.vmem [resolvable:$true] %s770_s28 }
  0x17   :  { %862 = vmatpush3.bf16.msra.mxu1 %v952_v3  ;;  %v960_v11 = vld [vmem:[#allocation2 + $0x90] sm:$0xff]   ;;  %v961_v12 = vld [vmem:[#allocation2 + $0x58] sm:$0xff]   ;;  %v965_v16 = vld [vmem:[#allocation2 + $0x60] sm:$0xff]   ;;  %s1030_s29 = scalar_lea.vmem %s771_s28, 32  ;;  %p1035_p9 = scmp.lt.s32.totalorder %s771_s28, %s771_s28 }
  0x18   :  { %863 = vmatprep.subr.bf16.mxu1 %v955_v6  ;;  %v962_v13 = vld [vmem:[#allocation2 + $0x18] sm:$0xff]   ;;  %v966_v17 = vld [vmem:[#allocation2 + $0x20] sm:$0xff]   ;;  %v969_v20 = vld [vmem:[#allocation2 + $0x68] sm:$0xff]   ;;  %v46_v34 = vsub.s32 %v43_v28, %v45_v29  ;;  %p1031_p8 = scmp.ne.s32.totalorder %s771_s28, %s1030_s29  ;;  %p1036_p10 = scmp.lt.s32.totalorder %s1030_s29, %s1030_s29 }
  0x19   :  { %842 = vmatpush3.bf16.msra.mxu0 %v954_v5  ;;  %v963_v14 = vld [vmem:[#allocation2 + $0xd8] sm:$0xff]   ;;  %v967_v18 = vld [vmem:[#allocation2 + $0xe0] sm:$0xff]   ;;  %v970_v24 = vld [vmem:[#allocation2 + $0x28] sm:$0xff]  }
  0x1a   :  { %843 = vmatprep.subr.bf16.mxu0 %v957_v8  ;;  %v964_v15 = vld [vmem:[#allocation2 + $0x98] sm:$0xff]   ;;  %v968_v19 = vld [vmem:[#allocation2 + $0xa0] sm:$0xff]   ;;  %v971_v25 = vld [vmem:[#allocation2 + $0xe8] sm:$0xff]   ;;  %p1037_p11 = por %p1036_p10, %p1035_p9 }
  0x1b   :  { %864 = vmatpush3.bf16.msra.mxu1 %v956_v7  ;;  %v972_v26 = vld [vmem:[#allocation2 + $0xa8] sm:$0xff]   ;;  %v973_v27 = vld [vmem:[#allocation2 + $0x70] sm:$0xff]   ;;  %v977_v33 = vld [vmem:[#allocation2 + $0x78] sm:$0xff]  }
  0x1c   :  { %865 = vmatprep.subr.bf16.mxu1 %v959_v10  ;;  %v974_v30 = vld [vmem:[#allocation2 + $0x30] sm:$0xff]   ;;  %v978_v35 = vld [vmem:[#allocation2 + $0x38] sm:$0xff]   ;;  %v36_v37 = vld [vmem:[%s1167_s0] sm:$0xff]  ;;  %p1038_p12 = pnand %p1037_p11, %p1031_p8 }
  0x1d   :  { %844 = vmatpush3.bf16.msra.mxu0 %v958_v9  ;;  %v975_v31 = vld [vmem:[#allocation2 + $0xf0] sm:$0xff]   ;;  %v979_v36 = vld [vmem:[#allocation2 + $0xf8] sm:$0xff]   ;;  %v47_v38 = vrot.slane %v36_v37, %v46_v34  ;;  %v40_v40 = vcombine.high %v36_v37, %v36_v37  ;;  %v981_v41 = vld [vmem:[#allocation2 + $0x140] sm:$0xff]  }
  0x1e   :  { %845 = vmatprep.subr.bf16.mxu0 %v961_v12  ;;  %v976_v32 = vld [vmem:[#allocation2 + $0xb0] sm:$0xff]   ;;  %v980_v39 = vld [vmem:[#allocation2 + $0xb8] sm:$0xff]   ;;  %v983_v48 = vld [vmem:[#allocation2 + $0x100] sm:$0xff]  }
  0x1f   :  { %866 = vmatpush3.bf16.msra.mxu1 %v960_v11  ;;  %v55_v42 = vcombine.high %v47_v38, %v47_v38  ;;  %v54_v43 = vrot.slane %v40_v40, %v46_v34  ;;  %v80_v44 = vpack.c.bf16 %v47_v38, %v47_v38  ;;  %v984_v50 = vld [vmem:[#allocation2 + $0x148] sm:$0xff]   ;;  %v986_v53 = vld [vmem:[#allocation2 + $0x150] sm:$0xff]   ;;  %v988_v55 = vld [vmem:[#allocation2 + $0x158] sm:$0xff]  }
  0x20   :  { %867 = vmatprep.subr.bf16.mxu1 %v963_v14  ;;  %v985_v52 = vld [vmem:[#allocation2 + $0x108] sm:$0xff]   ;;  %v987_v54 = vld [vmem:[#allocation2 + $0x110] sm:$0xff]   ;;  %v989_v56 = vld [vmem:[#allocation2 + $0x118] sm:$0xff]  }
  0x21   :  { %846 = vmatpush3.bf16.msra.mxu0 %v962_v13  ;;  %v81_v46 = vpack.c.bf16 %v55_v42, %v55_v42  ;;  %v56_v47 = vcombine.high %v54_v43, %v54_v43  ;;  %v82_v49 = vpack.c.bf16 %v54_v43, %v54_v43  ;;  %v990_v57 = vld [vmem:[#allocation2 + $0x160] sm:$0xff]   ;;  %v37_v59 = vld [vmem:[%s1167_s0 + $0x8] sm:$0x3f]  ;;  %v994_v5 = vld [vmem:[#allocation2 + $0x170] sm:$0xff]  }
  0x22   :  { %847 = vmatprep.subr.bf16.mxu0 %v965_v16  ;;  %v998_v58 = vld [vmem:[#allocation2 + $0x180] sm:$0xff]   ;;  %v57_v61 = vcombine.high %v37_v59, %v37_v59  ;;  %v64_v62 = vrot.slane %v37_v59, %v46_v34  ;;  %v992_v63 = vld [vmem:[#allocation2 + $0x168] sm:$0xff]   ;;  %v995_v6 = vld [vmem:[#allocation2 + $0x130] sm:$0xff]  }
  0x23   :  { %868 = vmatpush3.bf16.msra.mxu1 %v964_v15  ;;  %522 = vmatprep.mubr.bf16.mxu0 %v81_v46  ;;  %v83_v51 = vpack.c.bf16 %v56_v47, %v56_v47  ;;  %v991_v60 = vld [vmem:[#allocation2 + $0x120] sm:$0xff]   ;;  %v993_v4 = vld [vmem:[#allocation2 + $0x128] sm:$0xff]   ;;  %v996_v7 = vld [vmem:[#allocation2 + $0x178] sm:$0xff]  }
  0x24   :  { %869 = vmatprep.subr.bf16.mxu1 %v967_v18  ;;  %v71_v0 = vrot.slane %v57_v61, %v46_v34  ;;  %v72_v1 = vcombine.high %v64_v62, %v64_v62  ;;  %v997_v8 = vld [vmem:[#allocation2 + $0x138] sm:$0xff]   ;;  %v84_v9 = vpack.c.bf16 %v64_v62, %v64_v62  ;;  %v1000_v10 = vld [vmem:[%s1170_s3] sm:$0xff]   ;;  %v1001_v11 = vld [vmem:[%s1170_s3 + $0x8] sm:$0xff]  }
  0x25   :  { %848 = vmatpush3.bf16.msra.mxu0 %v966_v17  ;;  %562 = vmatprep.mubr.bf16.mxu1 %v83_v51  ;;  %v1002_v12 = vld [vmem:[%s1170_s3 + $0x10] sm:$0xff]   ;;  %v1003_v13 = vld [vmem:[%s1170_s3 + $0x18] sm:$0xff]   ;;  %v1004_v14 = vld [vmem:[%s1170_s3 + $0x20] sm:$0xff]  }
  0x26   :  { %849 = vmatprep.subr.bf16.mxu0 %v969_v20  ;;  %v85_v2 = vpack.c.bf16 %v72_v1, %v72_v1  ;;  %v86_v3 = vpack.c.bf16 %v71_v0, %v71_v0  ;;  %v1005_v15 = vld [vmem:[%s1170_s3 + $0x28] sm:$0xff]   ;;  %v1006_v16 = vld [vmem:[%s1170_s3 + $0x30] sm:$0xff]   ;;  %v1007_v17 = vld [vmem:[%s1170_s3 + $0x38] sm:$0xff]  }
  0x27   :  { %870 = vmatpush3.bf16.msra.mxu1 %v968_v19  ;;  %v779_v19 = vld [vmem:[%s1169_s2] ss:$0 sm:$0xff] }
  0x28   :  { %871 = vmatprep.subr.bf16.mxu1 %v971_v25 }
  0x29   :  { %850 = vmatpush3.bf16.msra.mxu0 %v970_v24 }
  0x2a   :  { %851 = vmatprep.subr.bf16.mxu0 %v973_v27 }
  0x2b   :  { %872 = vmatpush3.bf16.msra.mxu1 %v972_v26 }
  0x2c   :  { %873 = vmatprep.subr.bf16.mxu1 %v975_v31 }
  0x2d   :  { %852 = vmatpush3.bf16.msra.mxu0 %v974_v30 }
  0x2e   :  { %853 = vmatprep.subr.bf16.mxu0 %v977_v33 }
  0x2f   :  { %874 = vmatpush3.bf16.msra.mxu1 %v976_v32 }
  0x30   :  { %875 = vmatprep.subr.bf16.mxu1 %v979_v36 }
  0x31   :  { %854 = vmatpush3.bf16.msra.mxu0 %v978_v35 }
  0x32   :  { %883 = vmatprep.subr.bf16.mxu0 %v981_v41 }
  0x33   :  { %876 = vmatpush3.bf16.msra.mxu1 %v980_v39 }
  0x34   :  { %916 = vmatprep.subr.bf16.mxu1 %v1060_v45  ;;  %523 = vmatmul.mubr.bf16.vlgmr.msra.gmra.mrb[0].mxu0 %v80_v44  ;;  %v830_v44 = vld [vmem:[%s1171_s4] ss:$0 sm:$0xff] }
  0x35   :  { %884 = vmatpush3.bf16.msra.mxu0 %v983_v48  ;;  %602 = vmatprep.mubr.bf16.mxu0 %v85_v2 }
  0x36   :  { %563 = vmatmul.mubr.bf16.vlgmr.msra.gmra.mrb[0].mxu1 %v82_v49  ;;  %885 = vmatprep.subr.bf16.mxu0 %v984_v50 }
  0x37   :  { %918 = vmatprep.mubr.msk.bf16.mxu1 %vm1061_vm0, %v1060_v45  ;;  %917 = vmatpush3.bf16.msra.mxu1 %v998_v58 }
  0x38   :  { %922 = vmatprep.subr.bf16.mxu1 %v1060_v45 }
  0x39   :  { %886 = vmatpush3.bf16.msra.mxu0 %v985_v52 }
  0x3a   :  { %887 = vmatprep.subr.bf16.mxu0 %v986_v53 }
  0x3d   :  { %888 = vmatpush3.bf16.msra.mxu0 %v987_v54 }
  0x3e   :  { %889 = vmatprep.subr.bf16.mxu0 %v988_v55  ;;  %919 = vmatmul.mubr.msk.bf16.vlgmr.msra.gmra.mrb[4].mxu1 %vm486_vm1, %v86_v3 }
  0x3f   :  { %938 = vmatprep.mubr.msk.bf16.mxu1 %vm1061_vm0, %v1060_v45  ;;  %923 = vmatpush3.bf16.msra.mxu1 %v1000_v10 }
  0x40   :  { %924 = vmatprep.subr.bf16.mxu1 %v1060_v45 }
  0x41   :  { %890 = vmatpush3.bf16.msra.mxu0 %v989_v56 }
  0x42   :  { %891 = vmatprep.subr.bf16.mxu0 %v990_v57 }
  0x43   :  { %925 = vmatpush3.bf16.msra.mxu1 %v1001_v11 }
  0x44   :  { %926 = vmatprep.subr.bf16.mxu1 %v1060_v45 }
  0x45   :  { %892 = vmatpush3.bf16.msra.mxu0 %v991_v60 }
  0x46   :  { %893 = vmatprep.subr.bf16.mxu0 %v992_v63 }
  0x47   :  { %927 = vmatpush3.bf16.msra.mxu1 %v1002_v12 }
  0x48   :  { %928 = vmatprep.subr.bf16.mxu1 %v1060_v45 }
  0x49   :  { %894 = vmatpush3.bf16.msra.mxu0 %v993_v4 }
  0x4a   :  { %895 = vmatprep.subr.bf16.mxu0 %v994_v5 }
  0x4b   :  { %929 = vmatpush3.bf16.msra.mxu1 %v1003_v13 }
  0x4c   :  { %930 = vmatprep.subr.bf16.mxu1 %v1060_v45 }
  0x4d   :  { %896 = vmatpush3.bf16.msra.mxu0 %v995_v6 }
  0x4e   :  { %897 = vmatprep.subr.bf16.mxu0 %v996_v7 }
  0x4f   :  { %931 = vmatpush3.bf16.msra.mxu1 %v1004_v14 }
  0x50   :  { %932 = vmatprep.subr.bf16.mxu1 %v1060_v45 }
  0x51   :  { %898 = vmatpush3.bf16.msra.mxu0 %v997_v8 }
  0x53   :  { %933 = vmatpush3.bf16.msra.mxu1 %v1005_v15 }
  0x54   :  { %603 = vmatmul.mubr.bf16.vlgmr.msra.gmra.mrb[4].mxu0 %v84_v9  ;;  %934 = vmatprep.subr.bf16.mxu1 %v1060_v45 }
  0x57   :  { %935 = vmatpush3.bf16.msra.mxu1 %v1006_v16 }
  0x58   :  { %936 = vmatprep.subr.bf16.mxu1 %v1060_v45 }
  0x5b   :  { %937 = vmatpush3.bf16.msra.mxu1 %v1007_v17 }
 0x107   :  { %v855_v18 = vpop.f32.mrb[0].mxu0 }
 0x108   :  { %v856_v20 = vpop.f32.mrb[1].mxu0 }
 0x109   :  { %v857_v21 = vadd.f32 %v856_v20, %v855_v18  ;;  %v858_v22 = vpop.f32.mrb[2].mxu0  ;;  %v877_v23 = vpop.f32.mrb[0].mxu1 }
 0x10a   :  { %v859_v24 = vpop.f32.mrb[3].mxu0  ;;  %v878_v25 = vpop.f32.mrb[1].mxu1 }
 0x10b   :  { %v525_v26 = vadd.f32 %v857_v21, %v779_v19  ;;  %v879_v27 = vadd.f32 %v878_v25, %v877_v23  ;;  %v880_v28 = vpop.f32.mrb[2].mxu1 }
 0x10c   :  { %v881_v29 = vpop.f32.mrb[3].mxu1 }
 0x10d   :  { %v565_v30 = vadd.f32 %v879_v27, %v525_v26 }
 0x111   :  { %v644_v31 = vpop.f32.mrb[4].mxu1 }
 0x112   :  { %v920_v32 = vpop.f32.mrb[5].mxu1 }
 0x113   :  { %v647_v33 = vpop.f32.mrb[6].mxu1 }
 0x114   :  { %v921_v34 = vpop.f32.mrb[7].mxu1 }
 0x127   :  { %v899_v35 = vpop.f32.mrb[4].mxu0 }
 0x128   :  { %v900_v36 = vpop.f32.mrb[5].mxu0 }
 0x129   :  { %v901_v37 = vadd.f32 %v900_v36, %v899_v35  ;;  %v902_v38 = vpop.f32.mrb[6].mxu0 }
 0x12a   :  { %v903_v39 = vpop.f32.mrb[7].mxu0 }
 0x12b   :  { %v605_v40 = vadd.f32 %v901_v37, %v565_v30 }
 0x12d   :  { %v645_v41 = vadd.f32 %v644_v31, %v605_v40 }
 0x12f   :  { %v650_v42 = vmax.f32 %v645_v41, 0.0 }
 0x131   :  { %v651_v43 = vpack.c.bf16 %v650_v42, %v650_v42 }
 0x133   :  { %939 = vmatmul.mubr.bf16.vlgmr.msra.gmra.mrb[8].mxu1 %v651_v43 }
 0x206   :  { %v757_v45 = vpop.f32.mrb[8].mxu1 }
 0x207   :  { %v758_v46 = vadd.f32 %v830_v44, %v757_v45  ;;  %v940_v47 = vpop.f32.mrb[9].mxu1 }
 0x208   :  { %v760_v48 = vpop.f32.mrb[10].mxu1 }
 0x209   :  { %763 = vst [vmem:[#allocation5] sm:$0x3] %v758_v46  ;;  %v941_v49 = vpop.f32.mrb[11].mxu1 }
 0x20a   :  { %1041 = shalt.err (!%p1038_p12)
}
 0x20b   :  { %s1042_s4 = scalar_lea.hbm %s1172_s5, 32 }
 0x20c   :  { %p1043_p13 = scmp.ne.s32.totalorder %s1172_s5, %s1042_s4  ;;  %p1046_p0 = scmp.lt.u32.totalorder %s1042_s4, %s1172_s5 }
 0x20e   :  { %p1048_p1 = pnand %p1046_p0, %p1043_p13 }
 0x210   :  { %1051 = shalt.err (!%p1048_p1)
}
 0x211   :  { %773 = dma.vmem_to_hbm [thread:$0]  %s771_s28, 32, %s1172_s5, [#allocation4]  }
 0x212   :  { %1054 = dma.done.wait [#allocation4], 32  }
 0x213   :  { %1055 = vsyncadd [#allocation4], 4294967264 }
 0x214   :  { %777 = vsyncpa [#allocation3], 1 }
 0x215   :  { %778 = vsyncpa [#allocation4], 1 }

</bundles_post_ra>
